<compile_context>
chip_gen: v6e
topology: v6e:2x2x1
jax: 0.10.0
libtpu: 0.0.40
codegen_flags: <defaults>
</compile_context>

<pallas_src>
import functools

import jax
import jax.numpy as jnp
from jax.experimental import pallas as pl
from jax.experimental.pallas import tpu as pltpu


def _round_up(x, m):
    return ((x + m - 1) // m) * m


# --------------------------------------------------------------------------- #
# Kernel
# --------------------------------------------------------------------------- #
def _mlp_kernel(num_hidden, x_ref, w1_ref, b1_ref, wh_ref, bh_ref,
                wo_ref, bo_ref, o_ref):
    """Full MLP forward for one batch tile (one grid step)."""
    # layer1 + sigmoid : (tile_b, 3) @ (3, Hp)
    h = jnp.dot(x_ref[...], w1_ref[...], preferred_element_type=jnp.float32)
    h = jax.nn.sigmoid(h + b1_ref[...])
    # hidden layers (num_hidden is a small compile-time constant -> static unroll)
    for i in range(num_hidden):
        h = jnp.dot(h, wh_ref[i], preferred_element_type=jnp.float32)
        h = jax.nn.sigmoid(h + bh_ref[i])
    # output layer (no activation) : (tile_b, Hp) @ (Hp, 1)
    out = jnp.dot(h, wo_ref[...], preferred_element_type=jnp.float32) + bo_ref[...]
    o_ref[...] = out.astype(o_ref.dtype)


# --------------------------------------------------------------------------- #
# Parameter handling
# --------------------------------------------------------------------------- #
def init_params(key, hidden_dim=10, num_layers=3, in_dim=3, out_dim=1):
    """PyTorch-style init U(-1/sqrt(fan_in), 1/sqrt(fan_in)); weights stored (in, out)."""
    if num_layers <= 2:
        raise ValueError("Number of layers must be greater than 2")
    num_hidden = num_layers - 2
    keys = jax.random.split(key, 2 * (num_hidden + 2))
    ki = iter(keys)

    def linear(kw, kb, fan_in, fan_out):
        bound = 1.0 / jnp.sqrt(jnp.float32(fan_in))
        w = jax.random.uniform(kw, (fan_in, fan_out), jnp.float32, -bound, bound)
        b = jax.random.uniform(kb, (fan_out,), jnp.float32, -bound, bound)
        return w, b

    w1, b1 = linear(next(ki), next(ki), in_dim, hidden_dim)
    whs, bhs = [], []
    for _ in range(num_hidden):
        w, b = linear(next(ki), next(ki), hidden_dim, hidden_dim)
        whs.append(w)
        bhs.append(b)
    wo, bo = linear(next(ki), next(ki), hidden_dim, out_dim)
    return (w1, b1, whs, bhs, wo, bo)


def prepare_params(params):
    """One-time padding/stacking of parameters into TPU-friendly layouts.

    Only the hidden dim is padded (to a multiple of 128); the input feature dim (3)
    and output dim (1) are kept as-is.  Call this once, reuse the result every step.
    """
    w1, b1, whs, bhs, wo, bo = params
    in_dim, hidden_dim = w1.shape
    out_dim = wo.shape[1]
    num_hidden = len(whs)
    Hp = _round_up(hidden_dim, 128)
    f32 = jnp.float32

    w1_p = jnp.zeros((in_dim, Hp), f32).at[:, :hidden_dim].set(w1)
    b1_p = jnp.zeros((1, Hp), f32).at[0, :hidden_dim].set(b1)
    nh = max(num_hidden, 1)
    wh_p = jnp.zeros((nh, Hp, Hp), f32)
    bh_p = jnp.zeros((nh, 1, Hp), f32)
    for i in range(num_hidden):
        wh_p = wh_p.at[i, :hidden_dim, :hidden_dim].set(whs[i])
        bh_p = bh_p.at[i, 0, :hidden_dim].set(bhs[i])
    wo_p = jnp.zeros((Hp, out_dim), f32).at[:hidden_dim, :].set(wo)
    bo_p = bo.reshape(1, out_dim).astype(f32)

    meta = dict(in_dim=in_dim, hidden_dim=hidden_dim, out_dim=out_dim,
                num_hidden=num_hidden, Hp=Hp)
    return (w1_p, b1_p, wh_p, bh_p, wo_p, bo_p), meta


# --------------------------------------------------------------------------- #
# Forward
# --------------------------------------------------------------------------- #
def mlp_forward_pallas(x, prepared, meta, *, tile_b=256):
    """Runs the full MLP forward inside a single tiled Pallas kernel."""
    w1_p, b1_p, wh_p, bh_p, wo_p, bo_p = prepared
    in_dim = meta["in_dim"]
    out_dim = meta["out_dim"]
    num_hidden = meta["num_hidden"]
    Hp = meta["Hp"]
    nh = wh_p.shape[0]

    B = x.shape[0]
    f32 = jnp.float32

    # Batch tile: >= 8 (sublane), capped at tile_b; pad batch to a multiple of it.
    tb = min(tile_b, _round_up(B, 8))
    Bp = _round_up(B, tb)
    if Bp != B:
        x_p = jnp.zeros((Bp, in_dim), f32).at[:B, :].set(x.astype(f32))
    else:
        x_p = x.astype(f32)

    num_tiles = Bp // tb

    # VMEM budget estimate (weights may be double-buffered by the pipeline even
    # with constant index maps; give generous headroom, clamp to v7x's 64 MiB).
    param_bytes = 4 * (in_dim * Hp + Hp + nh * (Hp * Hp + Hp) + Hp * out_dim + out_dim)
    act_bytes = 4 * tb * (in_dim + Hp + out_dim)
    vmem_limit = int(min(max(2 * param_bytes + 4 * act_bytes + (8 << 20), 32 << 20),
                         64 << 20))

    kernel = functools.partial(_mlp_kernel, num_hidden)

    out_p = pl.pallas_call(
        kernel,
        out_shape=jax.ShapeDtypeStruct((Bp, out_dim), f32),
        grid=(num_tiles,),
        in_specs=[
            pl.BlockSpec((tb, in_dim), lambda i: (i, 0)),        # x: tiled over batch
            pl.BlockSpec((in_dim, Hp), lambda i: (0, 0)),        # w1 (resident)
            pl.BlockSpec((1, Hp), lambda i: (0, 0)),             # b1
            pl.BlockSpec((nh, Hp, Hp), lambda i: (0, 0, 0)),     # hidden weights
            pl.BlockSpec((nh, 1, Hp), lambda i: (0, 0, 0)),      # hidden biases
            pl.BlockSpec((Hp, out_dim), lambda i: (0, 0)),       # wo
            pl.BlockSpec((1, out_dim), lambda i: (0, 0)),        # bo
        ],
        out_specs=pl.BlockSpec((tb, out_dim), lambda i: (i, 0)),
        compiler_params=pltpu.CompilerParams(
            dimension_semantics=("parallel",),
            vmem_limit_bytes=vmem_limit,
        ),
    )(x_p, w1_p, b1_p, wh_p, bh_p, wo_p, bo_p)

    return out_p[:B, :out_dim]


def mlp_forward_ref(x, params):
    """Pure-JAX reference of the PyTorch forward."""
    w1, b1, whs, bhs, wo, bo = params
    h = jax.nn.sigmoid(x @ w1 + b1)
    for w, b in zip(whs, bhs):
        h = jax.nn.sigmoid(h @ w + b)
    return h @ wo + bo


# --------------------------------------------------------------------------- #
# Test
# --------------------------------------------------------------------------- #
if __name__ == "__main__":
    key = jax.random.PRNGKey(0)

    # Case 1: module defaults (hidden_dim=10, num_layers=3), tiny batch.
    k_param, k_x, k_param2, k_x2 = jax.random.split(key, 4)
    params = init_params(k_param, hidden_dim=10, num_layers=3)
    prepared, meta = prepare_params(params)
    x = jax.random.normal(k_x, (4, 3), dtype=jnp.float32)

    out = jax.block_until_ready(mlp_forward_pallas(x, prepared, meta))
    ref = mlp_forward_ref(x, params)
    assert out.shape == (4, 1), out.shape
    assert jnp.allclose(out, ref, atol=1e-5, rtol=1e-5), (out, ref)

    # Case 2: deeper net + larger batch -> exercises multi-tile grid and the
    # hidden-layer loop (num_layers=4 -> 2 hidden layers), tile_b=128, grid=3.
    params2 = init_params(k_param2, hidden_dim=10, num_layers=4)
    prepared2, meta2 = prepare_params(params2)
    x2 = jax.random.normal(k_x2, (300, 3), dtype=jnp.float32)

    out2 = jax.block_until_ready(mlp_forward_pallas(x2, prepared2, meta2, tile_b=128))
    ref2 = mlp_forward_ref(x2, params2)
    assert out2.shape == (300, 1), out2.shape
    assert jnp.allclose(out2, ref2, atol=1e-5, rtol=1e-5)

    print("KERNEL_OK")
</pallas_src>

<mosaic_0001>
module attributes {stable_mosaic.version = 11 : i64} {
  func.func @_mlp_kernel(%arg0: i32, %arg1: memref<8x3xf32, #tpu.memory_space<vmem>>, %arg2: memref<3x128xf32, #tpu.memory_space<vmem>>, %arg3: memref<1x128xf32, #tpu.memory_space<vmem>>, %arg4: memref<1x128x128xf32, #tpu.memory_space<vmem>>, %arg5: memref<1x1x128xf32, #tpu.memory_space<vmem>>, %arg6: memref<128x1xf32, #tpu.memory_space<vmem>>, %arg7: memref<1x1xf32, #tpu.memory_space<vmem>>, %arg8: memref<8x1xf32, #tpu.memory_space<vmem>>) attributes {dimension_semantics = [#tpu.dimension_semantics<parallel>], iteration_bounds = array<i64: 1>, scalar_prefetch = 0 : i64, scratch_operands = 0 : i64, tpu.core_type = #tpu.core_type<tc>, window_params = [{transform_indices = @transform_0, window_bounds = array<i64: 8, 3>}, {pipeline_mode = #tpu.pipeline_mode<synchronous>, transform_indices = @transform_1, window_bounds = array<i64: 3, 128>}, {pipeline_mode = #tpu.pipeline_mode<synchronous>, transform_indices = @transform_2, window_bounds = array<i64: 1, 128>}, {pipeline_mode = #tpu.pipeline_mode<synchronous>, transform_indices = @transform_3, window_bounds = array<i64: 1, 128, 128>}, {pipeline_mode = #tpu.pipeline_mode<synchronous>, transform_indices = @transform_4, window_bounds = array<i64: 1, 1, 128>}, {pipeline_mode = #tpu.pipeline_mode<synchronous>, transform_indices = @transform_5, window_bounds = array<i64: 128, 1>}, {pipeline_mode = #tpu.pipeline_mode<synchronous>, transform_indices = @transform_6, window_bounds = array<i64: 1, 1>}, {transform_indices = @transform_7, window_bounds = array<i64: 8, 1>}]} {
    %c0 = arith.constant 0 : index
    %c0_0 = arith.constant 0 : index
    %0 = vector.load %arg1[%c0, %c0_0] : memref<8x3xf32, #tpu.memory_space<vmem>>, vector<8x3xf32>
    %c0_1 = arith.constant 0 : index
    %c0_2 = arith.constant 0 : index
    %1 = vector.load %arg2[%c0_1, %c0_2] : memref<3x128xf32, #tpu.memory_space<vmem>>, vector<3x128xf32>
    %cst = arith.constant dense<0.000000e+00> : vector<8x128xf32>
    %2 = tpu.matmul %0, %1, %cst {dimension_numbers = #tpu.dot_dimension_numbers<[1], [0], [0], [1], [0, 0, 1, 1], [], []>} : vector<8x3xf32>, vector<3x128xf32>, vector<8x128xf32> -> vector<8x128xf32>
    %c0_3 = arith.constant 0 : index
    %c0_4 = arith.constant 0 : index
    %3 = vector.load %arg3[%c0_3, %c0_4] : memref<1x128xf32, #tpu.memory_space<vmem>>, vector<1x128xf32>
    %4 = vector.broadcast %3 : vector<1x128xf32> to vector<8x128xf32>
    %5 = arith.addf %2, %4 : vector<8x128xf32>
    %6 = arith.negf %5 : vector<8x128xf32>
    %7 = math.exp %6 : vector<8x128xf32>
    %cst_5 = arith.constant 1.000000e+00 : f32
    %8 = vector.broadcast %cst_5 : f32 to vector<8x128xf32>
    %9 = arith.addf %8, %7 : vector<8x128xf32>
    %10 = arith.divf %8, %9 : vector<8x128xf32>
    %c0_6 = arith.constant 0 : index
    %c0_7 = arith.constant 0 : index
    %c0_8 = arith.constant 0 : index
    %11 = vector.load %arg4[%c0_6, %c0_7, %c0_8] : memref<1x128x128xf32, #tpu.memory_space<vmem>>, vector<1x128x128xf32>
    %12 = vector.shape_cast %11 : vector<1x128x128xf32> to vector<128x128xf32>
    %cst_9 = arith.constant dense<0.000000e+00> : vector<8x128xf32>
    %13 = tpu.matmul %10, %12, %cst_9 {dimension_numbers = #tpu.dot_dimension_numbers<[1], [0], [0], [1], [0, 0, 1, 1], [], []>} : vector<8x128xf32>, vector<128x128xf32>, vector<8x128xf32> -> vector<8x128xf32>
    %c0_10 = arith.constant 0 : index
    %c0_11 = arith.constant 0 : index
    %c0_12 = arith.constant 0 : index
    %14 = vector.load %arg5[%c0_10, %c0_11, %c0_12] : memref<1x1x128xf32, #tpu.memory_space<vmem>>, vector<1x1x128xf32>
    %15 = vector.shape_cast %14 : vector<1x1x128xf32> to vector<1x128xf32>
    %16 = vector.broadcast %15 : vector<1x128xf32> to vector<8x128xf32>
    %17 = arith.addf %13, %16 : vector<8x128xf32>
    %18 = arith.negf %17 : vector<8x128xf32>
    %19 = math.exp %18 : vector<8x128xf32>
    %cst_13 = arith.constant 1.000000e+00 : f32
    %20 = vector.broadcast %cst_13 : f32 to vector<8x128xf32>
    %21 = arith.addf %20, %19 : vector<8x128xf32>
    %22 = arith.divf %20, %21 : vector<8x128xf32>
    %c0_14 = arith.constant 0 : index
    %c0_15 = arith.constant 0 : index
    %23 = vector.load %arg6[%c0_14, %c0_15] : memref<128x1xf32, #tpu.memory_space<vmem>>, vector<128x1xf32>
    %cst_16 = arith.constant dense<0.000000e+00> : vector<8x1xf32>
    %24 = tpu.matmul %22, %23, %cst_16 {dimension_numbers = #tpu.dot_dimension_numbers<[1], [0], [0], [1], [0, 0, 1, 1], [], []>} : vector<8x128xf32>, vector<128x1xf32>, vector<8x1xf32> -> vector<8x1xf32>
    %c0_17 = arith.constant 0 : index
    %c0_18 = arith.constant 0 : index
    %25 = vector.load %arg7[%c0_17, %c0_18] : memref<1x1xf32, #tpu.memory_space<vmem>>, vector<1x1xf32>
    %26 = vector.broadcast %25 : vector<1x1xf32> to vector<8x1xf32>
    %27 = arith.addf %24, %26 : vector<8x1xf32>
    %c0_19 = arith.constant 0 : index
    %c0_20 = arith.constant 0 : index
    %28 = vector.load %arg8[%c0_19, %c0_20] : memref<8x1xf32, #tpu.memory_space<vmem>>, vector<8x1xf32>
    tpu.vector_store %arg8[%c0_19, %c0_20], %27 {strides = array<i32>} : memref<8x1xf32, #tpu.memory_space<vmem>>, vector<8x1xf32>,
    return
  }
  func.func @transform_0(%arg0: i32) -> (i32, i32) {
    %c0_i32 = arith.constant 0 : i32
    %c0_i32_0 = arith.constant 0 : i32
    return %arg0, %c0_i32 : i32, i32
  }
  func.func @transform_1(%arg0: i32) -> (i32, i32) {
    %c0_i32 = arith.constant 0 : i32
    %c0_i32_0 = arith.constant 0 : i32
    %c0_i32_1 = arith.constant 0 : i32
    return %c0_i32, %c0_i32_0 : i32, i32
  }
  func.func @transform_2(%arg0: i32) -> (i32, i32) {
    %c0_i32 = arith.constant 0 : i32
    %c0_i32_0 = arith.constant 0 : i32
    %c0_i32_1 = arith.constant 0 : i32
    return %c0_i32, %c0_i32_0 : i32, i32
  }
  func.func @transform_3(%arg0: i32) -> (i32, i32, i32) {
    %c0_i32 = arith.constant 0 : i32
    %c0_i32_0 = arith.constant 0 : i32
    %c0_i32_1 = arith.constant 0 : i32
    %c0_i32_2 = arith.constant 0 : i32
    return %c0_i32, %c0_i32_0, %c0_i32_1 : i32, i32, i32
  }
  func.func @transform_4(%arg0: i32) -> (i32, i32, i32) {
    %c0_i32 = arith.constant 0 : i32
    %c0_i32_0 = arith.constant 0 : i32
    %c0_i32_1 = arith.constant 0 : i32
    %c0_i32_2 = arith.constant 0 : i32
    return %c0_i32, %c0_i32_0, %c0_i32_1 : i32, i32, i32
  }
  func.func @transform_5(%arg0: i32) -> (i32, i32) {
    %c0_i32 = arith.constant 0 : i32
    %c0_i32_0 = arith.constant 0 : i32
    %c0_i32_1 = arith.constant 0 : i32
    return %c0_i32, %c0_i32_0 : i32, i32
  }
  func.func @transform_6(%arg0: i32) -> (i32, i32) {
    %c0_i32 = arith.constant 0 : i32
    %c0_i32_0 = arith.constant 0 : i32
    %c0_i32_1 = arith.constant 0 : i32
    return %c0_i32, %c0_i32_0 : i32, i32
  }
  func.func @transform_7(%arg0: i32) -> (i32, i32) {
    %c0_i32 = arith.constant 0 : i32
    %c0_i32_0 = arith.constant 0 : i32
    return %arg0, %c0_i32 : i32, i32
  }
}

</mosaic_0001>

<bundles_post_ra>
// kernel: tpu_custom_call.1
= control target key start
LH: loop header
LB: loop body
LE: loop exit
PB: predicated region body
PF: predicated region fallthrough
CT: control target
= control target key end

     0   :  { %vm41_vm0 = vcmask 1042432   ;;  %vm37_vm1 = vcmask 23552   ;;  %v447_v0 = vmov 0.0   ;;  %vm448_vm2 = vmmov 0   ;;  %s639_s1 = inlined_call_operand.vmem [shape: f32[3,128], index: 1, kind: input, shape index: {}]   ;;  %s640_s0 = inlined_call_operand.vmem [shape: f32[8,3], index: 0, kind: input, shape index: {}]   ;;  %s641_s3 = inlined_call_operand.vmem [shape: f32[1,128,128], index: 3, kind: input, shape index: {}]   ;;  %s642_s2 = inlined_call_operand.vmem [shape: f32[1,128], index: 2, kind: input, shape index: {}]   ;;  %s643_s5 = inlined_call_operand.vmem [shape: f32[128,1], index: 5, kind: input, shape index: {}]   ;;  %s644_s6 = inlined_call_operand.<no memory space> [shape: f32[1,1], index: 6, kind: input, shape index: {}]   ;;  %s645_s4 = inlined_call_operand.vmem [shape: f32[1,1,128], index: 4, kind: input, shape index: {}]   ;;  %s646_s7 = inlined_call_operand.vmem [shape: f32[8,1], index: 7, kind: output, shape index: {}]  }
   0x1   :  { %362 = vmatprep.subr.mxu0 %v447_v0  ;;  %v29_v1 = vld [vmem:[%s639_s1] sm:$0x7]  ;;  %364 = vmatprep.mubr.msk.f32.mxu0 %vm448_vm2, %v447_v0  ;;  %v136_v3 = vld [vmem:[%s641_s3 + $0x78] sm:$0xff]  ;;  %v135_v4 = vld [vmem:[%s641_s3 + $0x70] sm:$0xff]  ;;  %v12_v43 = vstv %s644_s6  ;;  %vm313_vm3 = vcmask 7168  }
   0x2   :  { %v28_v2 = vld [vmem:[%s640_s0] sm:$0xff]  ;;  %363 = vmatpush3.msk.msra.mxu0 %vm41_vm0, %v29_v1  ;;  %367 = vmatprep.subr.mxu1 %v447_v0  ;;  %v134_v5 = vld [vmem:[%s641_s3 + $0x68] sm:$0xff]  ;;  %v132_v7 = vld [vmem:[%s641_s3 + $0x58] sm:$0xff]  ;;  %13 = vst [vmem:[#allocation2] sm:$0x1] %v12_v43 }
   0x3   :  { %365 = vmatmul.mubr.msk.f32.vlgmr.msra.gmra.mxu0 %vm37_vm1, %v28_v2  ;;  %399 = vmatprep.mubr.msk.f32.mxu1 %vm448_vm2, %v447_v0  ;;  %v133_v6 = vld [vmem:[%s641_s3 + $0x60] sm:$0xff]  ;;  %v131_v8 = vld [vmem:[%s641_s3 + $0x50] sm:$0xff]  ;;  %v130_v9 = vld [vmem:[%s641_s3 + $0x48] sm:$0xff] }
   0x4   :  { %402 = vmatprep.subr.mxu0 %v447_v0  ;;  %434 = vmatprep.mubr.msk.f32.mxu0 %vm448_vm2, %v447_v0  ;;  %v129_v10 = vld [vmem:[%s641_s3 + $0x40] sm:$0xff]  ;;  %v128_v11 = vld [vmem:[%s641_s3 + $0x38] sm:$0xff]  ;;  %v127_v12 = vld [vmem:[%s641_s3 + $0x30] sm:$0xff] }
   0x5   :  { %368 = vmatpush3.msra.mxu1 %v136_v3  ;;  %v126_v13 = vld [vmem:[%s641_s3 + $0x28] sm:$0xff]  ;;  %v125_v14 = vld [vmem:[%s641_s3 + $0x20] sm:$0xff]  ;;  %v124_v15 = vld [vmem:[%s641_s3 + $0x18] sm:$0xff] }
   0x6   :  { %369 = vmatprep.subr.mxu1 %v447_v0  ;;  %v123_v16 = vld [vmem:[%s641_s3 + $0x10] sm:$0xff]  ;;  %v122_v17 = vld [vmem:[%s641_s3 + $0x8] sm:$0xff]  ;;  %v121_v18 = vld [vmem:[%s641_s3] sm:$0xff] }
   0x7   :  { %370 = vmatpush3.msra.mxu1 %v135_v4  ;;  %v319_v19 = vld [vmem:[%s642_s2] ss:$0 sm:$0xff]  ;;  %v235_v27 = vld [vmem:[%s643_s5 + $0x78] sm:$0xff]  ;;  %v234_v28 = vld [vmem:[%s643_s5 + $0x70] sm:$0xff] }
   0x8   :  { %371 = vmatprep.subr.mxu1 %v447_v0  ;;  %403 = vmatpush3.msra.mxu0 %v235_v27  ;;  %v233_v29 = vld [vmem:[%s643_s5 + $0x68] sm:$0xff]  ;;  %v232_v30 = vld [vmem:[%s643_s5 + $0x60] sm:$0xff]  ;;  %v231_v31 = vld [vmem:[%s643_s5 + $0x58] sm:$0xff] }
   0x9   :  { %372 = vmatpush3.msra.mxu1 %v134_v5  ;;  %404 = vmatprep.subr.mxu0 %v447_v0  ;;  %v230_v32 = vld [vmem:[%s643_s5 + $0x50] sm:$0xff]  ;;  %v229_v33 = vld [vmem:[%s643_s5 + $0x48] sm:$0xff]  ;;  %v228_v34 = vld [vmem:[%s643_s5 + $0x40] sm:$0xff] }
   0xa   :  { %373 = vmatprep.subr.mxu1 %v447_v0  ;;  %405 = vmatpush3.msra.mxu0 %v234_v28  ;;  %v227_v35 = vld [vmem:[%s643_s5 + $0x38] sm:$0xff]  ;;  %v226_v36 = vld [vmem:[%s643_s5 + $0x30] sm:$0xff]  ;;  %v225_v37 = vld [vmem:[%s643_s5 + $0x28] sm:$0xff] }
   0xb   :  { %374 = vmatpush3.msra.mxu1 %v133_v6  ;;  %406 = vmatprep.subr.mxu0 %v447_v0  ;;  %v224_v38 = vld [vmem:[%s643_s5 + $0x20] sm:$0xff]  ;;  %v223_v39 = vld [vmem:[%s643_s5 + $0x18] sm:$0xff]  ;;  %v222_v40 = vld [vmem:[%s643_s5 + $0x10] sm:$0xff] }
   0xc   :  { %375 = vmatprep.subr.mxu1 %v447_v0  ;;  %407 = vmatpush3.msra.mxu0 %v233_v29  ;;  %v221_v41 = vld [vmem:[%s643_s5 + $0x8] sm:$0xff]  ;;  %v220_v42 = vld [vmem:[%s643_s5] sm:$0xff] }
   0xd   :  { %376 = vmatpush3.msra.mxu1 %v132_v7  ;;  %408 = vmatprep.subr.mxu0 %v447_v0  ;;  %v323_v44 = vld [vmem:[%s645_s4] ss:$0 sm:$0xff] }
   0xe   :  { %377 = vmatprep.subr.mxu1 %v447_v0  ;;  %409 = vmatpush3.msra.mxu0 %v232_v30  ;;  %v325_v52 = vld [vmem:[#allocation2] ss:$0 sm:$0xff] }
   0xf   :  { %378 = vmatpush3.msra.mxu1 %v131_v8  ;;  %410 = vmatprep.subr.mxu0 %v447_v0 }
  0x10   :  { %379 = vmatprep.subr.mxu1 %v447_v0  ;;  %411 = vmatpush3.msra.mxu0 %v231_v31 }
  0x11   :  { %380 = vmatpush3.msra.mxu1 %v130_v9  ;;  %412 = vmatprep.subr.mxu0 %v447_v0 }
  0x12   :  { %381 = vmatprep.subr.mxu1 %v447_v0  ;;  %413 = vmatpush3.msra.mxu0 %v230_v32 }
  0x13   :  { %382 = vmatpush3.msra.mxu1 %v129_v10  ;;  %414 = vmatprep.subr.mxu0 %v447_v0 }
  0x14   :  { %383 = vmatprep.subr.mxu1 %v447_v0  ;;  %415 = vmatpush3.msra.mxu0 %v229_v33 }
  0x15   :  { %384 = vmatpush3.msra.mxu1 %v128_v11  ;;  %416 = vmatprep.subr.mxu0 %v447_v0 }
  0x16   :  { %385 = vmatprep.subr.mxu1 %v447_v0  ;;  %417 = vmatpush3.msra.mxu0 %v228_v34 }
  0x17   :  { %386 = vmatpush3.msra.mxu1 %v127_v12  ;;  %418 = vmatprep.subr.mxu0 %v447_v0 }
  0x18   :  { %387 = vmatprep.subr.mxu1 %v447_v0  ;;  %419 = vmatpush3.msra.mxu0 %v227_v35 }
  0x19   :  { %388 = vmatpush3.msra.mxu1 %v126_v13  ;;  %420 = vmatprep.subr.mxu0 %v447_v0 }
  0x1a   :  { %389 = vmatprep.subr.mxu1 %v447_v0  ;;  %421 = vmatpush3.msra.mxu0 %v226_v36 }
  0x1b   :  { %390 = vmatpush3.msra.mxu1 %v125_v14  ;;  %422 = vmatprep.subr.mxu0 %v447_v0 }
  0x1c   :  { %391 = vmatprep.subr.mxu1 %v447_v0  ;;  %423 = vmatpush3.msra.mxu0 %v225_v37 }
  0x1d   :  { %392 = vmatpush3.msra.mxu1 %v124_v15  ;;  %424 = vmatprep.subr.mxu0 %v447_v0 }
  0x1e   :  { %393 = vmatprep.subr.mxu1 %v447_v0  ;;  %425 = vmatpush3.msra.mxu0 %v224_v38 }
  0x1f   :  { %394 = vmatpush3.msra.mxu1 %v123_v16  ;;  %426 = vmatprep.subr.mxu0 %v447_v0 }
  0x20   :  { %395 = vmatprep.subr.mxu1 %v447_v0  ;;  %427 = vmatpush3.msra.mxu0 %v223_v39 }
  0x21   :  { %396 = vmatpush3.msra.mxu1 %v122_v17  ;;  %428 = vmatprep.subr.mxu0 %v447_v0 }
  0x22   :  { %397 = vmatprep.subr.mxu1 %v447_v0  ;;  %429 = vmatpush3.msra.mxu0 %v222_v40 }
  0x23   :  { %398 = vmatpush3.msra.mxu1 %v121_v18  ;;  %430 = vmatprep.subr.mxu0 %v447_v0 }
  0x24   :  { %431 = vmatpush3.msra.mxu0 %v221_v41 }
  0x25   :  { %432 = vmatprep.subr.mxu0 %v447_v0 }
  0x26   :  { %433 = vmatpush3.msra.mxu0 %v220_v42 }
  0xc3   :  { %v111_v20 = vpop.f32.mrf.mxu0 }
  0xc4   :  { %v112_v21 = vadd.f32 %v319_v19, %v111_v20 }
  0xc5   :  { %v366_v22 = vpop.f32.mrf.mxu0 }
  0xc6   :  { %v322_v23 = vmul.f32 -1.442695, %v112_v21 }
  0xc8   :  { %439 = vpow2.f32 %v322_v23 }
  0xd5   :  { %v440_v24 = vpop.eup %439 }
  0xd6   :  { %v118_v25 = vadd.f32 1.0, %v440_v24 }
  0xd8   :  { %441 = vrcp.f32 %v118_v25 }
  0xe5   :  { %v442_v26 = vpop.eup %441 }
  0xe6   :  { %400 = vmatmul.mubr.f32.vlgmr.msra.gmra.mxu1 %v442_v26 }
 0x1a6   :  { %v210_v45 = vpop.f32.mrf.mxu1 }
 0x1a7   :  { %v211_v46 = vadd.f32 %v323_v44, %v210_v45 }
 0x1a8   :  { %v401_v47 = vpop.f32.mrf.mxu1 }
 0x1a9   :  { %v324_v48 = vmul.f32 -1.442695, %v211_v46 }
 0x1ab   :  { %443 = vpow2.f32 %v324_v48 }
 0x1b8   :  { %v444_v49 = vpop.eup %443 }
 0x1b9   :  { %v217_v50 = vadd.f32 1.0, %v444_v49 }
 0x1bb   :  { %445 = vrcp.f32 %v217_v50 }
 0x1c8   :  { %v446_v51 = vpop.eup %445 }
 0x1c9   :  { %435 = vmatmul.mubr.f32.vlgmr.msra.gmra.mxu0 %v446_v51 }
 0x289   :  { %v309_v53 = vpop.f32.mrf.mxu0 }
 0x28a   :  { %v310_v54 = vadd.f32 %v325_v52, %v309_v53 }
 0x28b   :  { %v436_v55 = vpop.f32.mrf.mxu0 }
 0x28c   :  { %314 = vst.msk [vmem:[%s646_s7] sm:$0xff] %vm313_vm3, %v310_v54 }

</bundles_post_ra>
